<compile_context>
chip_gen: v7x
topology: tpu7x:2x2x1
jax: 0.10.0
libtpu: 0.0.40
codegen_flags: <defaults>
</compile_context>

<pallas_src>
import functools

import jax
import jax.numpy as jnp
from jax.experimental import pallas as pl
from jax.experimental.pallas import tpu as pltpu


def _round_up(x, m):
    return (x + m - 1) // m * m


# ---------------------------------------------------------------------------
# Fused kernel: label-smoothed CE (tiled over batch) + angular-margin triplet
# ---------------------------------------------------------------------------
def _fused_loss_kernel(logits_ref, labels_tile_ref, feats_ref, lab_col_ref,
                       lab_row_ref, out_ref, *, eps, n_rows, block_rows,
                       margin, normalize_feature, add_absolute,
                       absolute_loss_weight, ap_value, an_value):
    i = pl.program_id(0)
    n_tiles = pl.num_programs(0)

    @pl.when(i == 0)
    def _():
        out_ref[0] = jnp.float32(0.0)

    # ----- label-smoothed cross entropy on this batch tile -----------------
    x = logits_ref[...].astype(jnp.float32)              # (bt, C)
    labels = labels_tile_ref[...]                        # (bt, 1) int32
    bt, num_classes = x.shape

    # Target logit per row: compare + select + lane reduce (no one-hot blend).
    cls_ids = jax.lax.broadcasted_iota(jnp.int32, (bt, num_classes), 1)
    x_tgt = jnp.sum(jnp.where(cls_ids == labels, x, 0.0), axis=-1, keepdims=True)

    m = jnp.max(x, axis=-1, keepdims=True)
    lse = m + jnp.log(jnp.sum(jnp.exp(x - m), axis=-1, keepdims=True))   # (bt, 1)
    x_sum = jnp.sum(x, axis=-1, keepdims=True)                            # (bt, 1)

    # per-row CE with label smoothing: lse - (1-eps)*x_y - (eps/C)*sum_c x_c
    per_row = lse - (1.0 - eps) * x_tgt - (eps / num_classes) * x_sum

    # Mask rows past the true batch size (ragged last tile / padded block).
    row_ids = i * block_rows + jax.lax.broadcasted_iota(jnp.int32, (bt, 1), 0)
    per_row = jnp.where(row_ids < n_rows, per_row, 0.0)

    out_ref[0] += jnp.sum(per_row)

    # ----- angular-margin triplet part, once, on the last grid step --------
    @pl.when(i == n_tiles - 1)
    def _():
        f = feats_ref[...].astype(jnp.float32)            # (B, D)
        if normalize_feature:
            f = f * jax.lax.rsqrt(jnp.sum(f * f, axis=-1, keepdims=True))

        # dist = f @ f.T (contract feature dim on both operands; MXU, f32 acc)
        dist = jax.lax.dot_general(
            f, f, (((1,), (1,)), ((), ())),
            precision=jax.lax.Precision.HIGHEST,
            preferred_element_type=jnp.float32)            # (B, B)

        pos = lab_col_ref[...] == lab_row_ref[...]         # (B,1)==(1,B) -> (B,B)

        dist_ap = jnp.min(jnp.where(pos, dist, jnp.inf), axis=1, keepdims=True)
        dist_an = jnp.max(jnp.where(pos, -jnp.inf, dist), axis=1, keepdims=True)

        # MarginRankingLoss(margin)(dist_ap, dist_an, y=1), mean reduction.
        rank = jnp.mean(jnp.maximum(dist_an - dist_ap + margin, 0.0))
        trip = rank
        if add_absolute:
            ap_l = jnp.maximum(ap_value - dist_ap, 0.0)
            an_l = jnp.where(dist_an - an_value > 0.0, dist_an - an_value, 1.0)
            trip = (jnp.mean(an_l) + jnp.mean(ap_l)) * absolute_loss_weight + rank

        out_ref[0] = trip + out_ref[0] * (1.0 / n_rows)


# ---------------------------------------------------------------------------
# Public API: TripletAngularMarginLoss.forward
# ---------------------------------------------------------------------------
def triplet_angular_margin_loss(features, logits, labels, *, margin=0.5,
                                normalize_feature=True, add_absolute=True,
                                absolute_loss_weight=1.0, ap_value=0.8,
                                an_value=0.4, label_smoothing=0.1):
    B, C = logits.shape
    Bf, D = features.shape
    assert B == Bf, "features and logits must share the batch dimension"
    labels_i32 = labels.astype(jnp.int32)
    labels_col = labels_i32.reshape(B, 1)
    labels_row = labels_i32.reshape(1, B)

    # Batch tile: multiple of the sublane packing (8 for f32, 16 for bf16),
    # capped so one logits tile stays <= ~8 MiB (double-buffered pipeline fits
    # scoped VMEM on v5e / v6e / v7x).
    sub = 16 if logits.dtype == jnp.bfloat16 else 8
    bytes_per_row = C * jnp.dtype(logits.dtype).itemsize
    max_rows_vmem = max(sub, (8 * 1024 * 1024) // max(bytes_per_row, 1))
    bt = min(512, _round_up(B, sub), max(sub, (max_rows_vmem // sub) * sub))
    # TODO(synk): add a class-tiled online-softmax variant for C too large for
    # one lane-dense VMEM tile (100k+ class heads).

    kernel = functools.partial(
        _fused_loss_kernel,
        eps=float(label_smoothing), n_rows=B, block_rows=bt,
        margin=float(margin), normalize_feature=bool(normalize_feature),
        add_absolute=bool(add_absolute),
        absolute_loss_weight=float(absolute_loss_weight),
        ap_value=float(ap_value), an_value=float(an_value))

    loss = pl.pallas_call(
        kernel,
        out_shape=jax.ShapeDtypeStruct((1,), jnp.float32),
        grid=(pl.cdiv(B, bt),),
        in_specs=[
            pl.BlockSpec((bt, C), lambda i: (i, 0)),   # logits tile (lane-dense C)
            pl.BlockSpec((bt, 1), lambda i: (i, 0)),   # labels tile for CE
            pl.BlockSpec((B, D), lambda i: (0, 0)),    # features, resident
            pl.BlockSpec((B, 1), lambda i: (0, 0)),    # labels as column, resident
            pl.BlockSpec((1, B), lambda i: (0, 0)),    # labels as row (no transpose)
        ],
        out_specs=pl.BlockSpec(memory_space=pltpu.MemorySpace.SMEM),  # scalar loss
        compiler_params=pltpu.CompilerParams(
            # Batch axis reduces into the shared scalar output -> "arbitrary".
            dimension_semantics=("arbitrary",),
            vmem_limit_bytes=40 * 1024 * 1024,
        ),
    )(logits, labels_col, features, labels_col, labels_row)
    return loss[0]


# ---------------------------------------------------------------------------
# Pure-JAX reference mirroring the PyTorch module (for validation).
# ---------------------------------------------------------------------------
def _ref_loss(features, logits, labels, *, margin=0.5, normalize_feature=True,
              add_absolute=True, absolute_loss_weight=1.0, ap_value=0.8,
              an_value=0.4, label_smoothing=0.1):
    logits = logits.astype(jnp.float32)
    B, C = logits.shape
    logp = jax.nn.log_softmax(logits, axis=-1)
    nll = -logp[jnp.arange(B), labels]
    smooth = -jnp.mean(logp, axis=-1)
    loss_ce = jnp.mean((1.0 - label_smoothing) * nll + label_smoothing * smooth)

    f = features.astype(jnp.float32)
    if normalize_feature:
        f = f / jnp.linalg.norm(f, axis=-1, keepdims=True)
    dist = jnp.matmul(f, f.T, precision=jax.lax.Precision.HIGHEST)
    pos = labels[:, None] == labels[None, :]
    dist_ap = jnp.min(jnp.where(pos, dist, jnp.inf), axis=1)
    dist_an = jnp.max(jnp.where(pos, -jnp.inf, dist), axis=1)
    rank = jnp.mean(jnp.maximum(dist_an - dist_ap + margin, 0.0))
    loss = rank
    if add_absolute:
        ap_l = jnp.maximum(ap_value - dist_ap, 0.0)
        an_l = jnp.where(dist_an - an_value > 0.0, dist_an - an_value, 1.0)
        loss = (jnp.mean(an_l) + jnp.mean(ap_l)) * absolute_loss_weight + rank
    return loss + loss_ce


if __name__ == "__main__":
    key = jax.random.PRNGKey(0)
    B, C, D = 8, 128, 32   # batch, num_classes, feat_dim

    k_feat, k_logit = jax.random.split(key, 2)
    features = jax.random.normal(k_feat, (B, D), dtype=jnp.float32)
    logits = jax.random.normal(k_logit, (B, C), dtype=jnp.float32)
    # Equal class counts so the PyTorch `dist[is_pos].view(bs, -1)` semantics hold
    # (same number of positives/negatives per row).
    labels = jnp.array([0, 1, 2, 3, 0, 1, 2, 3], dtype=jnp.int32)

    loss = triplet_angular_margin_loss(features, logits, labels)
    jax.block_until_ready(loss)

    ref = _ref_loss(features, logits, labels)
    assert jnp.allclose(loss, ref, rtol=1e-4, atol=1e-4), (loss, ref)

    print("KERNEL_OK")
</pallas_src>

<mosaic_0001>
module attributes {stable_mosaic.version = 11 : i64} {
  func.func @_fused_loss_kernel(%arg0: i32, %arg1: memref<8x128xf32, #tpu.memory_space<vmem>>, %arg2: memref<8x1xi32, #tpu.memory_space<vmem>>, %arg3: memref<8x32xf32, #tpu.memory_space<vmem>>, %arg4: memref<8x1xi32, #tpu.memory_space<vmem>>, %arg5: memref<1x8xi32, #tpu.memory_space<vmem>>, %arg6: memref<1xf32, #tpu.memory_space<smem>>) attributes {dimension_semantics = [#tpu.dimension_semantics<arbitrary>], iteration_bounds = array<i64: 1>, scalar_prefetch = 0 : i64, scratch_operands = 0 : i64, tpu.core_type = #tpu.core_type<tc>, window_params = [{transform_indices = @transform_0, window_bounds = array<i64: 8, 128>}, {transform_indices = @transform_1, window_bounds = array<i64: 8, 1>}, {pipeline_mode = #tpu.pipeline_mode<synchronous>, transform_indices = @transform_2, window_bounds = array<i64: 8, 32>}, {pipeline_mode = #tpu.pipeline_mode<synchronous>, transform_indices = @transform_3, window_bounds = array<i64: 8, 1>}, {pipeline_mode = #tpu.pipeline_mode<synchronous>, transform_indices = @transform_4, window_bounds = array<i64: 1, 8>}, {transform_indices = @transform_5, window_bounds = array<i64: 1>}]} {
    %c0_i32 = arith.constant 0 : i32
    %0 = arith.cmpi eq, %arg0, %c0_i32 : i32
    %1 = arith.extui %0 : i1 to i32
    %c0_i32_0 = arith.constant 0 : i32
    %2 = arith.cmpi ne, %1, %c0_i32_0 : i32
    scf.if %2 {
      %cst_17 = arith.constant 0.000000e+00 : f32
      %c0_18 = arith.constant 0 : index
      %47 = memref.load %arg6[%c0_18] : memref<1xf32, #tpu.memory_space<smem>>
      memref.store %cst_17, %arg6[%c0_18] : memref<1xf32, #tpu.memory_space<smem>>
    } else {
    }
    %c0 = arith.constant 0 : index
    %c0_1 = arith.constant 0 : index
    %3 = vector.load %arg1[%c0, %c0_1] : memref<8x128xf32, #tpu.memory_space<vmem>>, vector<8x128xf32>
    %c0_2 = arith.constant 0 : index
    %c0_3 = arith.constant 0 : index
    %4 = vector.load %arg2[%c0_2, %c0_3] : memref<8x1xi32, #tpu.memory_space<vmem>>, vector<8x1xi32>
    %5 = tpu.iota {dimensions = array<i32: 1>} : vector<8x128xi32>
    %6 = vector.broadcast %4 : vector<8x1xi32> to vector<8x128xi32>
    %7 = arith.cmpi eq, %5, %6 : vector<8x128xi32>
    %cst = arith.constant 0.000000e+00 : f32
    %8 = vector.broadcast %cst : f32 to vector<8x128xf32>
    %9 = arith.select %7, %3, %8 : vector<8x128xi1>, vector<8x128xf32>
    %cst_4 = arith.constant dense<0.000000e+00> : vector<8xf32>
    %10 = vector.multi_reduction <add>, %9, %cst_4 [1] : vector<8x128xf32> to vector<8xf32>
    %11 = vector.shape_cast %10 : vector<8xf32> to vector<8x1xf32>
    %cst_5 = arith.constant dense<0xFF800000> : vector<8xf32>
    %12 = vector.multi_reduction <maximumf>, %3, %cst_5 [1] : vector<8x128xf32> to vector<8xf32>
    %13 = vector.shape_cast %12 : vector<8xf32> to vector<8x1xf32>
    %14 = vector.broadcast %13 : vector<8x1xf32> to vector<8x128xf32>
    %15 = arith.subf %3, %14 : vector<8x128xf32>
    %16 = math.exp %15 : vector<8x128xf32>
    %cst_6 = arith.constant dense<0.000000e+00> : vector<8xf32>
    %17 = vector.multi_reduction <add>, %16, %cst_6 [1] : vector<8x128xf32> to vector<8xf32>
    %18 = vector.shape_cast %17 : vector<8xf32> to vector<8x1xf32>
    %19 = math.log %18 : vector<8x1xf32>
    %20 = arith.addf %13, %19 : vector<8x1xf32>
    %cst_7 = arith.constant dense<0.000000e+00> : vector<8xf32>
    %21 = vector.multi_reduction <add>, %3, %cst_7 [1] : vector<8x128xf32> to vector<8xf32>
    %22 = vector.shape_cast %21 : vector<8xf32> to vector<8x1xf32>
    %cst_8 = arith.constant 0.899999976 : f32
    %23 = vector.broadcast %cst_8 : f32 to vector<8x1xf32>
    %24 = arith.mulf %23, %11 : vector<8x1xf32>
    %25 = arith.subf %20, %24 : vector<8x1xf32>
    %cst_9 = arith.constant 7.812500e-04 : f32
    %26 = vector.broadcast %cst_9 : f32 to vector<8x1xf32>
    %27 = arith.mulf %26, %22 : vector<8x1xf32>
    %28 = arith.subf %25, %27 : vector<8x1xf32>
    %c8_i32 = arith.constant 8 : i32
    %29 = arith.muli %arg0, %c8_i32 : i32
    %30 = tpu.iota {dimensions = array<i32: 0>} : vector<8x1xi32>
    %31 = vector.broadcast %29 : i32 to vector<8x1xi32>
    %32 = arith.addi %31, %30 : vector<8x1xi32>
    %c8_i32_10 = arith.constant 8 : i32
    %33 = vector.broadcast %c8_i32_10 : i32 to vector<8x1xi32>
    %34 = arith.cmpi slt, %32, %33 : vector<8x1xi32>
    %cst_11 = arith.constant 0.000000e+00 : f32
    %35 = vector.broadcast %cst_11 : f32 to vector<8x1xf32>
    %36 = arith.select %34, %28, %35 : vector<8x1xi1>, vector<8x1xf32>
    %c0_12 = arith.constant 0 : index
    %37 = memref.load %arg6[%c0_12] : memref<1xf32, #tpu.memory_space<smem>>
    %38 = vector.shape_cast %36 : vector<8x1xf32> to vector<1x8x1xf32>
    %cst_13 = arith.constant dense<0.000000e+00> : vector<1xf32>
    %39 = vector.multi_reduction <add>, %38, %cst_13 [1, 2] : vector<1x8x1xf32> to vector<1xf32>
    %40 = vector.shape_cast %39 : vector<1xf32> to vector<1x1x1xf32>
    %41 = vector.extract %40[0, 0, 0] : f32 from vector<1x1x1xf32>
    %42 = arith.addf %37, %41 : f32
    %c0_14 = arith.constant 0 : index
    %43 = memref.load %arg6[%c0_14] : memref<1xf32, #tpu.memory_space<smem>>
    memref.store %42, %arg6[%c0_14] : memref<1xf32, #tpu.memory_space<smem>>
    %c0_i32_15 = arith.constant 0 : i32
    %44 = arith.cmpi eq, %arg0, %c0_i32_15 : i32
    %45 = arith.extui %44 : i1 to i32
    %c0_i32_16 = arith.constant 0 : i32
    %46 = arith.cmpi ne, %45, %c0_i32_16 : i32
    scf.if %46 {
      %c0_17 = arith.constant 0 : index
      %c0_18 = arith.constant 0 : index
      %47 = vector.load %arg3[%c0_17, %c0_18] : memref<8x32xf32, #tpu.memory_space<vmem>>, vector<8x32xf32>
      %48 = arith.mulf %47, %47 : vector<8x32xf32>
      %cst_19 = arith.constant dense<0.000000e+00> : vector<8xf32>
      %49 = vector.multi_reduction <add>, %48, %cst_19 [1] : vector<8x32xf32> to vector<8xf32>
      %50 = vector.shape_cast %49 : vector<8xf32> to vector<8x1xf32>
      %51 = math.rsqrt %50 : vector<8x1xf32>
      %52 = vector.broadcast %51 : vector<8x1xf32> to vector<8x32xf32>
      %53 = arith.mulf %47, %52 : vector<8x32xf32>
      %cst_20 = arith.constant dense<0.000000e+00> : vector<8x8xf32>
      %54 = tpu.matmul %53, %53, %cst_20 {dimension_numbers = #tpu.dot_dimension_numbers<[1], [1], [0], [0], [0, 0, 1, 0], [], []>, precision = #tpu.contract_precision<fp32>} : vector<8x32xf32>, vector<8x32xf32>, vector<8x8xf32> -> vector<8x8xf32>
      %c0_21 = arith.constant 0 : index
      %c0_22 = arith.constant 0 : index
      %55 = vector.load %arg4[%c0_21, %c0_22] : memref<8x1xi32, #tpu.memory_space<vmem>>, vector<8x1xi32>
      %c0_23 = arith.constant 0 : index
      %c0_24 = arith.constant 0 : index
      %56 = vector.load %arg5[%c0_23, %c0_24] : memref<1x8xi32, #tpu.memory_space<vmem>>, vector<1x8xi32>
      %57 = vector.broadcast %55 : vector<8x1xi32> to vector<8x8xi32>
      %58 = vector.broadcast %56 : vector<1x8xi32> to vector<8x8xi32>
      %59 = arith.cmpi eq, %57, %58 : vector<8x8xi32>
      %cst_25 = arith.constant 0x7F800000 : f32
      %60 = vector.broadcast %cst_25 : f32 to vector<8x8xf32>
      %61 = arith.select %59, %54, %60 : vector<8x8xi1>, vector<8x8xf32>
      %cst_26 = arith.constant dense<0x7F800000> : vector<8xf32>
      %62 = vector.multi_reduction <minimumf>, %61, %cst_26 [1] : vector<8x8xf32> to vector<8xf32>
      %63 = vector.shape_cast %62 : vector<8xf32> to vector<8x1xf32>
      %cst_27 = arith.constant 0xFF800000 : f32
      %64 = vector.broadcast %cst_27 : f32 to vector<8x8xf32>
      %65 = arith.select %59, %64, %54 : vector<8x8xi1>, vector<8x8xf32>
      %cst_28 = arith.constant dense<0xFF800000> : vector<8xf32>
      %66 = vector.multi_reduction <maximumf>, %65, %cst_28 [1] : vector<8x8xf32> to vector<8xf32>
      %67 = vector.shape_cast %66 : vector<8xf32> to vector<8x1xf32>
      %68 = arith.subf %67, %63 : vector<8x1xf32>
      %cst_29 = arith.constant 5.000000e-01 : f32
      %69 = vector.broadcast %cst_29 : f32 to vector<8x1xf32>
      %70 = arith.addf %68, %69 : vector<8x1xf32>
      %cst_30 = arith.constant 0.000000e+00 : f32
      %71 = vector.broadcast %cst_30 : f32 to vector<8x1xf32>
      %72 = arith.maximumf %70, %71 : vector<8x1xf32>
      %73 = vector.shape_cast %72 : vector<8x1xf32> to vector<1x8x1xf32>
      %cst_31 = arith.constant dense<0.000000e+00> : vector<1xf32>
      %74 = vector.multi_reduction <add>, %73, %cst_31 [1, 2] : vector<1x8x1xf32> to vector<1xf32>
      %75 = vector.shape_cast %74 : vector<1xf32> to vector<1x1x1xf32>
      %76 = vector.extract %75[0, 0, 0] : f32 from vector<1x1x1xf32>
      %cst_32 = arith.constant 8.000000e+00 : f32
      %77 = arith.divf %76, %cst_32 : f32
      %cst_33 = arith.constant 8.000000e-01 : f32
      %78 = vector.broadcast %cst_33 : f32 to vector<8x1xf32>
      %79 = arith.subf %78, %63 : vector<8x1xf32>
      %cst_34 = arith.constant 0.000000e+00 : f32
      %80 = vector.broadcast %cst_34 : f32 to vector<8x1xf32>
      %81 = arith.maximumf %79, %80 : vector<8x1xf32>
      %cst_35 = arith.constant 4.000000e-01 : f32
      %82 = vector.broadcast %cst_35 : f32 to vector<8x1xf32>
      %83 = arith.subf %67, %82 : vector<8x1xf32>
      %cst_36 = arith.constant 0.000000e+00 : f32
      %84 = vector.broadcast %cst_36 : f32 to vector<8x1xf32>
      %85 = arith.cmpf ogt, %83, %84 : vector<8x1xf32>
      %cst_37 = arith.constant 4.000000e-01 : f32
      %86 = vector.broadcast %cst_37 : f32 to vector<8x1xf32>
      %87 = arith.subf %67, %86 : vector<8x1xf32>
      %cst_38 = arith.constant 1.000000e+00 : f32
      %88 = vector.broadcast %cst_38 : f32 to vector<8x1xf32>
      %89 = arith.select %85, %87, %88 : vector<8x1xi1>, vector<8x1xf32>
      %90 = vector.shape_cast %89 : vector<8x1xf32> to vector<1x8x1xf32>
      %cst_39 = arith.constant dense<0.000000e+00> : vector<1xf32>
      %91 = vector.multi_reduction <add>, %90, %cst_39 [1, 2] : vector<1x8x1xf32> to vector<1xf32>
      %92 = vector.shape_cast %91 : vector<1xf32> to vector<1x1x1xf32>
      %93 = vector.extract %92[0, 0, 0] : f32 from vector<1x1x1xf32>
      %cst_40 = arith.constant 8.000000e+00 : f32
      %94 = arith.divf %93, %cst_40 : f32
      %95 = vector.shape_cast %81 : vector<8x1xf32> to vector<1x8x1xf32>
      %cst_41 = arith.constant dense<0.000000e+00> : vector<1xf32>
      %96 = vector.multi_reduction <add>, %95, %cst_41 [1, 2] : vector<1x8x1xf32> to vector<1xf32>
      %97 = vector.shape_cast %96 : vector<1xf32> to vector<1x1x1xf32>
      %98 = vector.extract %97[0, 0, 0] : f32 from vector<1x1x1xf32>
      %cst_42 = arith.constant 8.000000e+00 : f32
      %99 = arith.divf %98, %cst_42 : f32
      %100 = arith.addf %94, %99 : f32
      %cst_43 = arith.constant 1.000000e+00 : f32
      %101 = arith.mulf %100, %cst_43 : f32
      %102 = arith.addf %101, %77 : f32
      %c0_44 = arith.constant 0 : index
      %103 = memref.load %arg6[%c0_44] : memref<1xf32, #tpu.memory_space<smem>>
      %cst_45 = arith.constant 1.250000e-01 : f32
      %104 = arith.mulf %103, %cst_45 : f32
      %105 = arith.addf %102, %104 : f32
      %c0_46 = arith.constant 0 : index
      %106 = memref.load %arg6[%c0_46] : memref<1xf32, #tpu.memory_space<smem>>
      memref.store %105, %arg6[%c0_46] : memref<1xf32, #tpu.memory_space<smem>>
    } else {
    }
    return
  }
  func.func @transform_0(%arg0: i32) -> (i32, i32) {
    %c0_i32 = arith.constant 0 : i32
    %c0_i32_0 = arith.constant 0 : i32
    return %arg0, %c0_i32 : i32, i32
  }
  func.func @transform_1(%arg0: i32) -> (i32, i32) {
    %c0_i32 = arith.constant 0 : i32
    %c0_i32_0 = arith.constant 0 : i32
    return %arg0, %c0_i32 : i32, i32
  }
  func.func @transform_2(%arg0: i32) -> (i32, i32) {
    %c0_i32 = arith.constant 0 : i32
    %c0_i32_0 = arith.constant 0 : i32
    %c0_i32_1 = arith.constant 0 : i32
    return %c0_i32, %c0_i32_0 : i32, i32
  }
  func.func @transform_3(%arg0: i32) -> (i32, i32) {
    %c0_i32 = arith.constant 0 : i32
    %c0_i32_0 = arith.constant 0 : i32
    %c0_i32_1 = arith.constant 0 : i32
    return %c0_i32, %c0_i32_0 : i32, i32
  }
  func.func @transform_4(%arg0: i32) -> (i32, i32) {
    %c0_i32 = arith.constant 0 : i32
    %c0_i32_0 = arith.constant 0 : i32
    %c0_i32_1 = arith.constant 0 : i32
    return %c0_i32, %c0_i32_0 : i32, i32
  }
  func.func @transform_5(%arg0: i32) -> i32 {
    %c0_i32 = arith.constant 0 : i32
    %c0_i32_0 = arith.constant 0 : i32
    return %c0_i32 : i32
  }
}

</mosaic_0001>

<bundles_post_ra>
// kernel: tpu_custom_call.1
= control target key start
LH: loop header
LB: loop body
LE: loop exit
PB: predicated region body
PF: predicated region fallthrough
CT: control target
= control target key end

     0   :  { %vm81_vm0 = vcmask 261120   ;;  %v707_v3 = vmov 0   ;;  %s780_s0 = inlined_call_operand.vmem [shape: f32[8,128], index: 0, kind: input, shape index: {}]   ;;  %s781_s1 = inlined_call_operand.vmem [shape: s32[8,1], index: 1, kind: input, shape index: {}]   ;;  %s782_s2 = inlined_call_operand.vmem [shape: f32[8,32], index: 2, kind: input, shape index: {}]   ;;  %s783_s3 = inlined_call_operand.vmem [shape: s32[8,1], index: 3, kind: input, shape index: {}]   ;;  %s784_s4 = inlined_call_operand.vmem [shape: s32[1,8], index: 4, kind: input, shape index: {}]   ;;  %s785_s5 = inlined_call_operand.hbm [shape: f32[1], index: 5, kind: output, shape index: {}]  }
   0x1   :  { %v79_v0 = vld [vmem:[%s782_s2] sm:$0xff]  ;;  %687 = vset.pattern.permute.xlu1 %v707_v3  ;;  %688 = vset.pattern.permute.xlu0 %v707_v3 }
   0x2   :  { %v28_v1 = vld [vmem:[%s781_s1] sm:$0xff]  ;;  %v80_v2 = vmul.f32 %v79_v0, %v79_v0 }
   0x3   :  { %10 = vsyncpa [#allocation3], 0  ;;  %32 = vperm.xlu1 %687, %v28_v1   ;;  %v27_v5 = vld [vmem:[%s780_s0] sm:$0xff]  ;;  %v708_v6 = vmov 0.0   ;;  %vm709_vm1 = vmmov 0   ;;  %v29_v8 = vlaneseq  ;;  %vm547_vm3 = vcmask 64512  }
   0x4   :  { %v82_v4 = vsel %vm81_vm0, %v80_v2, 0.0  ;;  %635 = vmatprep.subr.mxu1 %v708_v6  ;;  %650 = vmatprep.subr.mxu0 %v708_v6  ;;  %v536_v7 = vld [vmem:[%s783_s3] sm:$0xff]  ;;  %vm62_vm5 = vcmask 7168   ;;  %s695_s11 = scalar_lea.hbm %s785_s5, 16 }
   0x5   :  { %83 = vadd.xlane.f32.xlu0 %v82_v4  ;;  %652 = vmatprep.mubr.msk.f32.mxu0 %vm709_vm1, %v708_v6  ;;  %v30_v9 = vand.u32 127, %v29_v8  ;;  %v621_v32 = vld [vmem:[%s784_s4] ss:$0 sm:$0xff]  ;;  %p696_p0 = scmp.ne.s32.totalorder %s785_s5, %s695_s11  ;;  %p699_p1 = scmp.lt.u32.totalorder %s695_s11, %s785_s5 }
   0x6   :  { %637 = vmatprep.mubr.msk.f32.mxu1 %vm709_vm1, %v708_v6 }
   0x7   :  { %539 = vperm.xlu1 %687, %v536_v7   ;;  %p701_p2 = pnand %p699_p1, %p696_p0 }
   0x9   :  { %38 = vmax.xlane.f32.xlu0 %v27_v5 }
  0x82   :  { %v33_v10 = vpop.permute.xlu1 %32 }
  0x83   :  { %vm34_vm2 = vcmp.eq.s32.totalorder %v30_v9, %v33_v10 }
  0x84   :  { %v35_v11 = vsel %vm34_vm2, %v27_v5, 0.0 }
  0x85   :  { %36 = vadd.xlane.f32.xlu1 %v35_v11 }
  0x86   :  { %v540_v26 = vpop.permute.xlu1 %539 }
  0x87   :  { %vm545_vm4 = vcmp.eq.s32.totalorder %v540_v26, %v621_v32 }
  0x92   :  { %v84_v12 = vpop.xlane.xlu0 %83 }
  0x93   :  { %689 = vrsqrt.f32 %v84_v12 }
  0x96   :  { %v39_v13 = vpop.xlane.xlu0 %38 }
  0x97   :  { %v40_v14 = vsub.f32 %v27_v5, %v39_v13 }
  0x99   :  { %v41_v15 = vmul.f32 1.442695, %v40_v14 }
  0x9b   :  { %691 = vpow2.f32 %v41_v15 }
  0x9d   :  { %v690_v16 = vpop.eup %689 }
  0x9e   :  { %v86_v17 = vmul.f32 %v690_v16, %v79_v0 }
  0xa0   :  { %v88_v18 = vsel %vm81_vm0, %v86_v17, 0 }
  0xa1   :  { %v91_v19 = vand.u32 4294901760, %v88_v18 }
  0xa3   :  { %636 = vmatpush3.xpose.msra.mxu1 %v91_v19  ;;  %651 = vmatpush3.xpose.msra.mxu0 %v91_v19  ;;  %v157_v20 = vsub.f32 %v88_v18, %v91_v19 }
  0xa4   :  { %655 = vmatprep.subr.mxu0 %v708_v6  ;;  %640 = vmatprep.subr.mxu1 %v708_v6 }
  0xa5   :  { %v692_v21 = vpop.eup %691  ;;  %v158_v22 = vand.u32 4294901760, %v157_v20 }
  0xa6   :  { %43 = vadd.xlane.f32.xlu0 %v692_v21 }
  0xa7   :  { %653 = vmatmul.mubr.f32.vlgmr.msra.gmra.mrb[0].mxu0 %v158_v22  ;;  %v159_v23 = vsub.f32 %v157_v20, %v158_v22 }
  0xa8   :  { %656 = vmatpush3.xpose.msra.mxu0 %v158_v22  ;;  %657 = vmatprep.mubr.msk.f32.mxu0 %vm709_vm1, %v708_v6 }
  0xa9   :  { %v160_v24 = vand.u32 4294901760, %v159_v23  ;;  %660 = vmatprep.subr.mxu0 %v708_v6 }
  0xaa   :  { %48 = vadd.xlane.f32.xlu0 %v27_v5 }
  0xab   :  { %638 = vmatmul.mubr.f32.vlgmr.msra.gmra.mrb[0].mxu1 %v160_v24 }
  0xac   :  { %641 = vmatpush3.xpose.msra.mxu1 %v160_v24  ;;  %642 = vmatprep.mubr.msk.f32.mxu1 %vm709_vm1, %v708_v6 }
  0xad   :  { %645 = vmatprep.subr.mxu1 %v708_v6 }
  0xaf   :  { %658 = vmatmul.mubr.f32.vlgmr.msra.gmra.mrb[0].mxu0 %v91_v19 }
  0xb0   :  { %661 = vmatpush3.xpose.msra.mxu0 %v91_v19  ;;  %662 = vmatprep.mubr.msk.f32.mxu0 %vm709_vm1, %v708_v6 }
  0xb3   :  { %643 = vmatmul.mubr.f32.vlgmr.msra.gmra.mrb[0].mxu1 %v91_v19 }
  0xb4   :  { %646 = vmatpush3.xpose.msra.mxu1 %v157_v20  ;;  %647 = vmatprep.mubr.msk.f32.mxu1 %vm709_vm1, %v708_v6 }
  0xb7   :  { %663 = vmatmul.mubr.f32.vlgmr.msra.gmra.mrb[0].mxu0 %v91_v19 }
  0xbb   :  { %648 = vmatmul.mubr.f32.vlgmr.msra.gmra.mrb[0].mxu1 %v157_v20 }
 0x112   :  { %v37_v30 = vpop.xlane.xlu1 %36 }
 0x113   :  { %v50_v34 = vmul.f32 0.9, %v37_v30 }
 0x133   :  { %v44_v25 = vpop.xlane.xlu0 %43 }
 0x134   :  { %693 = vlog2.f32 %v44_v25 }
 0x137   :  { %v49_v36 = vpop.xlane.xlu0 %48 }
 0x138   :  { %v52_v41 = vmul.f32 0.00078125, %v49_v36 }
 0x13e   :  { %v694_v27 = vpop.eup %693 }
 0x13f   :  { %v46_v28 = vmul.f32 0.6931472, %v694_v27 }
 0x141   :  { %v47_v33 = vadd.f32 %v46_v28, %v39_v13 }
 0x143   :  { %v51_v40 = vsub.f32 %v47_v33, %v50_v34 }
 0x145   :  { %v53_v45 = vsub.f32 %v51_v40, %v52_v41 }
 0x147   :  { %v63_v46 = vsel %vm62_vm5, %v53_v45, 0.0 }
 0x18a   :  { %v532_v29 = vpop.f32.mrb[0].mxu0 }
 0x18b   :  { %v664_v31 = vpop.f32.mrb[1].mxu0 }
 0x18e   :  { %v312_v35 = vpop.f32.mrb[0].mxu1 }
 0x18f   :  { %v665_v37 = vadd.f32 %v532_v29, %v312_v35  ;;  %v649_v38 = vpop.f32.mrb[1].mxu1 }
 0x191   :  { %v546_v39 = vsel %vm545_vm4, %v665_v37, inf  ;;  %v551_v43 = vsel %vm545_vm4, -inf, %v665_v37 }
 0x192   :  { %v548_v42 = vsel %vm547_vm3, %v546_v39, inf  ;;  %v552_v44 = vsel %vm547_vm3, %v551_v43, -inf }
 0x193   :  { %549 = vmin.xlane.f32.xlu0 %v548_v42 }
 0x197   :  { %553 = vmax.xlane.f32.xlu0 %v552_v44 }
 0x19b   :  { %64 = vadd.xlane.f32.xlu0 %v63_v46 }
 0x220   :  { %v550_v47 = vpop.xlane.xlu0 %549 }
 0x221   :  { %v571_v54 = vsub.f32 0.8, %v550_v47 }
 0x223   :  { %v572_v59 = vmax.f32 %v571_v54, 0.0 }
 0x224   :  { %v554_v48 = vpop.xlane.xlu0 %553 }
 0x225   :  { %v555_v49 = vsub.f32 %v554_v48, %v550_v47  ;;  %v622_v50 = vadd.f32 -0.4, %v554_v48  ;;  %v589_v63 = vsel %vm62_vm5, %v572_v59, 0.0 }
 0x227   :  { %v556_v51 = vadd.f32 0.5, %v555_v49  ;;  %vm574_vm6 = vcmp.gt.f32.partialorder %v622_v50, 0.0 }
 0x228   :  { %v65_v52 = vpop.xlane.xlu0 %64  ;;  %v575_v53 = vsel %vm574_vm6, %v622_v50, 1.0 }
 0x229   :  { %v66_v55 = vrot.slane %v65_v52, 4  ;;  %v576_v56 = vsel %vm62_vm5, %v575_v53, 0.0  ;;  %v557_v57 = vmax.f32 %v556_v51, 0.0 }
 0x22a   :  { %577 = vadd.xlane.f32.xlu0 %v576_v56 }
 0x22b   :  { %v67_v58 = vadd.f32 %v66_v55, %v65_v52  ;;  %v558_v61 = vsel %vm62_vm5, %v557_v57, 0.0 }
 0x22d   :  { %v68_v60 = vrot.slane %v67_v58, 2 }
 0x22e   :  { %559 = vadd.xlane.f32.xlu0 %v558_v61 }
 0x22f   :  { %v69_v62 = vadd.f32 %v68_v60, %v67_v58 }
 0x231   :  { %v70_v0 = vrot.slane %v69_v62, 1 }
 0x232   :  { %590 = vadd.xlane.f32.xlu0 %v589_v63 }
 0x233   :  { %v71_v1 = vadd.f32 %v70_v0, %v69_v62 }
 0x235   :  { %674 = vpush %v71_v1 }
 0x266   :  { %s675_s4 = spop %674 }
 0x267   :  { %s605_s7 = smul.f32 0.125, %s675_s4 }
 0x2b7   :  { %v578_v2 = vpop.xlane.xlu0 %577 }
 0x2b8   :  { %v579_v3 = vrot.slane %v578_v2, 4 }
 0x2ba   :  { %v580_v4 = vadd.f32 %v579_v3, %v578_v2 }
 0x2bb   :  { %v560_v5 = vpop.xlane.xlu0 %559 }
 0x2bc   :  { %v581_v6 = vrot.slane %v580_v4, 2  ;;  %v561_v7 = vrot.slane %v560_v5, 4 }
 0x2be   :  { %v562_v8 = vadd.f32 %v561_v7, %v560_v5  ;;  %v582_v10 = vadd.f32 %v581_v6, %v580_v4 }
 0x2bf   :  { %v591_v9 = vpop.xlane.xlu0 %590 }
 0x2c0   :  { %v563_v11 = vrot.slane %v562_v8, 2  ;;  %v592_v12 = vrot.slane %v591_v9, 4  ;;  %v583_v15 = vrot.slane %v582_v10, 1 }
 0x2c2   :  { %v593_v13 = vadd.f32 %v592_v12, %v591_v9  ;;  %v564_v14 = vadd.f32 %v563_v11, %v562_v8  ;;  %v584_v20 = vadd.f32 %v583_v15, %v582_v10 }
 0x2c4   :  { %v594_v16 = vrot.slane %v593_v13, 2  ;;  %v565_v17 = vrot.slane %v564_v14, 1 }
 0x2c6   :  { %v595_v18 = vadd.f32 %v594_v16, %v593_v13  ;;  %v566_v19 = vadd.f32 %v565_v17, %v564_v14 }
 0x2c8   :  { %676 = vpush %v566_v19  ;;  %v596_v21 = vrot.slane %v595_v18, 1 }
 0x2c9   :  { %678 = vpush %v584_v20 }
 0x2ca   :  { %v597_v22 = vadd.f32 %v596_v21, %v595_v18 }
 0x2cc   :  { %680 = vpush %v597_v22 }
 0x2f9   :  { %s677_s24 = spop %676 }
 0x2fa   :  { %s679_s25 = spop %678  ;;  %s570_s29 = smul.f32 0.125, %s677_s24 }
 0x2fb   :  { %s588_s26 = smul.f32 0.125, %s679_s25 }
 0x2fd   :  { %s681_s27 = spop %680 }
 0x2fe   :  { %s601_s28 = smul.f32 0.125, %s681_s27 }
 0x300   :  { %s602_s30 = sadd.f32 %s601_s28, %s588_s26 }
 0x302   :  { %s603_s6 = sadd.f32 %s602_s30, %s570_s29 }
 0x304   :  { %s606_s8 = sadd.f32 %s605_s7, %s603_s6 }
 0x306   :  { %607 = sst [smem:[#allocation2]] %s606_s8 }
 0x307   :  { %704 = shalt.err (!%p701_p2)
}
 0x308   :  { %s710_s16 = smov [#allocation2]  }
 0x309   :  { %615 = dma.smem_to_hbm %s710_s16, 16, %s785_s5, [#allocation3]  }
 0x30a   :  { %705 = dma.done.wait [#allocation3], 16  }
 0x30b   :  { %706 = vsyncadd [#allocation3], 4294967280 }
 0x30c   :  { %619 = sfence }
 0x30d   :  { %620 = vsyncpa [#allocation3], 1 }

</bundles_post_ra>
